<compile_context>
chip_gen: v6e
topology: v6e:2x2x1
jax: 0.10.0
libtpu: 0.0.40
codegen_flags: <defaults>
</compile_context>

<pallas_src>
import functools

import jax
import jax.numpy as jnp
from jax.experimental import pallas as pl
from jax.experimental.pallas import tpu as pltpu

F_DIM = 2048  # backbone feature width (ResNet-101 final channels)


def _heads_kernel(x_ref, w_ref, b_ref, m_ref, o_ref):
    """Fused multi-head linear: o = act(x @ W + b), act = sigmoid on masked cols."""
    # bf16 x bf16 -> f32 accumulation on the MXU, single step (no K loop).
    z = jnp.dot(x_ref[...], w_ref[...], preferred_element_type=jnp.float32)
    z = z + b_ref[...]                      # bias broadcast over batch (f32)
    sig = 1.0 / (1.0 + jnp.exp(-z))         # f32 epilogue (EUP exp)
    o_ref[...] = jnp.where(m_ref[...] > 0.0, sig, z).astype(o_ref.dtype)


def _pick_batch_tile(B):
    """Sublane-friendly batch tile: 256/128-row blocks for big batches, else full extent."""
    for tb in (256, 128):
        if B % tb == 0 and B > tb:
            return tb
    return B  # full-extent batch block (legal: block dim == full array dim)


@jax.jit
def _fused_heads(feat_bf16, w_bf16, b_f32, m_f32):
    """feat_bf16: (B, F_DIM) bf16; w_bf16: (F_DIM, C) bf16; returns (B, C) f32."""
    B, F = feat_bf16.shape
    C = w_bf16.shape[1]
    TB = _pick_batch_tile(B)
    grid = (B // TB,)
    return pl.pallas_call(
        _heads_kernel,
        out_shape=jax.ShapeDtypeStruct((B, C), jnp.float32),
        grid_spec=pltpu.PrefetchScalarGridSpec(
            num_scalar_prefetch=0,
            grid=grid,
            in_specs=[
                pl.BlockSpec((TB, F), lambda i: (i, 0)),   # features (batch-tiled)
                pl.BlockSpec((F, C), lambda i: (0, 0)),    # packed head weights (resident)
                pl.BlockSpec((1, C), lambda i: (0, 0)),    # packed bias
                pl.BlockSpec((1, C), lambda i: (0, 0)),    # sigmoid column mask
            ],
            out_specs=pl.BlockSpec((TB, C), lambda i: (i, 0)),
        ),
        compiler_params=pltpu.CompilerParams(
            dimension_semantics=("parallel",),
        ),
    )(feat_bf16, w_bf16, b_f32, m_f32)


class AttributePredictionPallas:
    """Head-only reimplementation of AttributePrediction.forward (post-backbone)."""

    HEADS = ("color", "type", "wheel", "luggage", "sky", "bumper")
    SIGMOID_HEADS = frozenset({"wheel", "luggage", "sky", "bumper"})

    def __init__(self, n_color, n_type, n_wheel, n_luggage, n_sky, n_bumper,
                 key=jax.random.PRNGKey(42)):
        sizes = dict(color=n_color, type=n_type, wheel=n_wheel,
                     luggage=n_luggage, sky=n_sky, bumper=n_bumper)
        self.sizes = sizes

        # Deterministic per-head parameter init (PyTorch-Linear-style uniform).
        w_cols, b_cols, m_cols = [], [], []
        self.offsets = {}
        off = 0
        bound = 1.0 / float(jnp.sqrt(jnp.float32(F_DIM)))
        for name in self.HEADS:
            n = sizes[name]
            key, kw, kb = jax.random.split(key, 3)
            w = jax.random.uniform(kw, (F_DIM, n), jnp.float32, -bound, bound)
            b = jax.random.uniform(kb, (n,), jnp.float32, -bound, bound)
            w_cols.append(w)
            b_cols.append(b)
            m_cols.append(
                jnp.full((n,), 1.0 if name in self.SIGMOID_HEADS else 0.0,
                         jnp.float32))
            self.offsets[name] = (off, off + n)
            off += n
        self.c_total = off

        # Packed (in_features x out_features) layout; no channel padding in HBM.
        self.w_packed = jnp.concatenate(w_cols, axis=1).astype(jnp.bfloat16)
        self.b_packed = jnp.concatenate(b_cols)[None, :]          # f32
        self.sig_mask = jnp.concatenate(m_cols)[None, :]          # f32

    def __call__(self, x):
        # x: (B, 2048, 1, 1) backbone output (NCHW), matching torch.flatten(x, 1).
        feat = x.reshape(x.shape[0], -1).astype(jnp.bfloat16)
        assert feat.shape[1] == F_DIM
        out = _fused_heads(feat, self.w_packed, self.b_packed, self.sig_mask)
        return {name: out[:, lo:hi] for name, (lo, hi) in self.offsets.items()}


def _reference(model, x):
    """Pure-JAX reference (bf16-matched matmul) for correctness check."""
    feat = x.reshape(x.shape[0], -1).astype(jnp.bfloat16)
    z = jnp.dot(feat, model.w_packed, preferred_element_type=jnp.float32)
    z = z + model.b_packed
    z = jnp.where(model.sig_mask > 0, jax.nn.sigmoid(z), z)
    return {name: z[:, lo:hi] for name, (lo, hi) in model.offsets.items()}


if __name__ == "__main__":
    key = jax.random.PRNGKey(0)
    B = 2
    # Backbone output shape: (B, 2048, 1, 1) — what the module flattens.
    x = jax.random.normal(key, (B, F_DIM, 1, 1), jnp.float32)

    model = AttributePredictionPallas(
        n_color=10, n_type=6, n_wheel=2, n_luggage=2, n_sky=2, n_bumper=2)

    out = model(x)
    jax.block_until_ready(out)

    ref = _reference(model, x)
    for name in model.HEADS:
        assert out[name].shape == ref[name].shape, name
        assert jnp.allclose(out[name], ref[name], atol=2e-3, rtol=2e-3), name

    print("KERNEL_OK")
</pallas_src>

<mosaic_0001>
module attributes {stable_mosaic.version = 11 : i64} {
  func.func @_heads_kernel(%arg0: i32, %arg1: memref<2x2048xbf16, #tpu.memory_space<vmem>>, %arg2: memref<2048x24xbf16, #tpu.memory_space<vmem>>, %arg3: memref<1x24xf32, #tpu.memory_space<vmem>>, %arg4: memref<1x24xf32, #tpu.memory_space<vmem>>, %arg5: memref<2x24xf32, #tpu.memory_space<vmem>>) attributes {dimension_semantics = [#tpu.dimension_semantics<parallel>], iteration_bounds = array<i64: 1>, scalar_prefetch = 0 : i64, scratch_operands = 0 : i64, tpu.core_type = #tpu.core_type<tc>, window_params = [{transform_indices = @transform_0, window_bounds = array<i64: 2, 2048>}, {pipeline_mode = #tpu.pipeline_mode<synchronous>, transform_indices = @transform_1, window_bounds = array<i64: 2048, 24>}, {pipeline_mode = #tpu.pipeline_mode<synchronous>, transform_indices = @transform_2, window_bounds = array<i64: 1, 24>}, {pipeline_mode = #tpu.pipeline_mode<synchronous>, transform_indices = @transform_3, window_bounds = array<i64: 1, 24>}, {transform_indices = @transform_4, window_bounds = array<i64: 2, 24>}]} {
    %c0 = arith.constant 0 : index
    %c0_0 = arith.constant 0 : index
    %0 = vector.load %arg1[%c0, %c0_0] : memref<2x2048xbf16, #tpu.memory_space<vmem>>, vector<2x2048xbf16>
    %c0_1 = arith.constant 0 : index
    %c0_2 = arith.constant 0 : index
    %1 = vector.load %arg2[%c0_1, %c0_2] : memref<2048x24xbf16, #tpu.memory_space<vmem>>, vector<2048x24xbf16>
    %cst = arith.constant dense<0.000000e+00> : vector<2x24xf32>
    %2 = tpu.matmul %0, %1, %cst {dimension_numbers = #tpu.dot_dimension_numbers<[1], [0], [0], [1], [0, 0, 1, 1], [], []>} : vector<2x2048xbf16>, vector<2048x24xbf16>, vector<2x24xf32> -> vector<2x24xf32>
    %c0_3 = arith.constant 0 : index
    %c0_4 = arith.constant 0 : index
    %3 = vector.load %arg3[%c0_3, %c0_4] : memref<1x24xf32, #tpu.memory_space<vmem>>, vector<1x24xf32>
    %4 = vector.broadcast %3 : vector<1x24xf32> to vector<2x24xf32>
    %5 = arith.addf %2, %4 : vector<2x24xf32>
    %cst_5 = arith.constant 0.000000e+00 : f32
    %6 = vector.broadcast %cst_5 : f32 to vector<2x24xf32>
    %7 = arith.subf %6, %5 : vector<2x24xf32>
    %8 = math.exp %7 : vector<2x24xf32>
    %cst_6 = arith.constant 1.000000e+00 : f32
    %9 = vector.broadcast %cst_6 : f32 to vector<2x24xf32>
    %10 = arith.addf %9, %8 : vector<2x24xf32>
    %cst_7 = arith.constant 1.000000e+00 : f32
    %11 = vector.broadcast %cst_7 : f32 to vector<2x24xf32>
    %12 = arith.divf %11, %10 : vector<2x24xf32>
    %c0_8 = arith.constant 0 : index
    %c0_9 = arith.constant 0 : index
    %13 = vector.load %arg4[%c0_8, %c0_9] : memref<1x24xf32, #tpu.memory_space<vmem>>, vector<1x24xf32>
    %cst_10 = arith.constant 0.000000e+00 : f32
    %14 = vector.broadcast %cst_10 : f32 to vector<1x24xf32>
    %15 = arith.cmpf ogt, %13, %14 : vector<1x24xf32>
    %16 = vector.shape_cast %15 : vector<1x24xi1> to vector<1x24xi1>
    %17 = vector.broadcast %16 : vector<1x24xi1> to vector<2x24xi1>
    %18 = arith.select %17, %12, %5 : vector<2x24xi1>, vector<2x24xf32>
    %c0_11 = arith.constant 0 : index
    %c0_12 = arith.constant 0 : index
    %19 = vector.load %arg5[%c0_11, %c0_12] : memref<2x24xf32, #tpu.memory_space<vmem>>, vector<2x24xf32>
    tpu.vector_store %arg5[%c0_11, %c0_12], %18 {strides = array<i32>} : memref<2x24xf32, #tpu.memory_space<vmem>>, vector<2x24xf32>,
    return
  }
  func.func @transform_0(%arg0: i32) -> (i32, i32) {
    %c0_i32 = arith.constant 0 : i32
    %c0_i32_0 = arith.constant 0 : i32
    return %arg0, %c0_i32 : i32, i32
  }
  func.func @transform_1(%arg0: i32) -> (i32, i32) {
    %c0_i32 = arith.constant 0 : i32
    %c0_i32_0 = arith.constant 0 : i32
    %c0_i32_1 = arith.constant 0 : i32
    return %c0_i32, %c0_i32_0 : i32, i32
  }
  func.func @transform_2(%arg0: i32) -> (i32, i32) {
    %c0_i32 = arith.constant 0 : i32
    %c0_i32_0 = arith.constant 0 : i32
    %c0_i32_1 = arith.constant 0 : i32
    return %c0_i32, %c0_i32_0 : i32, i32
  }
  func.func @transform_3(%arg0: i32) -> (i32, i32) {
    %c0_i32 = arith.constant 0 : i32
    %c0_i32_0 = arith.constant 0 : i32
    %c0_i32_1 = arith.constant 0 : i32
    return %c0_i32, %c0_i32_0 : i32, i32
  }
  func.func @transform_4(%arg0: i32) -> (i32, i32) {
    %c0_i32 = arith.constant 0 : i32
    %c0_i32_0 = arith.constant 0 : i32
    return %arg0, %c0_i32 : i32, i32
  }
}

</mosaic_0001>

<bundles_post_ra>
// kernel: _fused_heads.1
= control target key start
LH: loop header
LB: loop body
LE: loop exit
PB: predicated region body
PF: predicated region fallthrough
CT: control target
= control target key end

     0   :  { %v290_v28 = vlaneseq  ;;  %v1983_v36 = vmov 1966171168   ;;  %s2438_s0 = inlined_call_operand.vmem [shape: bf16[2,2048], index: 0, kind: input, shape index: {}]   ;;  %s2439_s1 = inlined_call_operand.vmem [shape: bf16[2048,24], index: 1, kind: input, shape index: {}]   ;;  %s2440_s2 = inlined_call_operand.vmem [shape: f32[1,24], index: 2, kind: input, shape index: {}]   ;;  %s2441_s3 = inlined_call_operand.vmem [shape: f32[1,24], index: 3, kind: input, shape index: {}]   ;;  %s2442_s4 = inlined_call_operand.hbm [shape: f32[2,24], index: 4, kind: output, shape index: {}]  }
   0x1   :  { %v1827_v0 = vld [vmem:[%s2439_s1 + $0x78] sm:$0xff]   ;;  %v1831_v4 = vld [vmem:[%s2439_s1 + $0x70] sm:$0xff]   ;;  %v1835_v8 = vld [vmem:[%s2439_s1 + $0x68] sm:$0xff]   ;;  %v288_v37 = vunpack.c.l.s4 %v1983_v36 }
   0x2   :  { %v1828_v1 = vld [vmem:[%s2439_s1 + $0xf8] sm:$0xff]   ;;  %1648 = vmatprep.subr.bf16.mxu0 %v1827_v0  ;;  %v1832_v5 = vld [vmem:[%s2439_s1 + $0xf0] sm:$0xff]   ;;  %v1836_v9 = vld [vmem:[%s2439_s1 + $0xe8] sm:$0xff]   ;;  %v2107_v33 = vshrl.u32 %v290_v28, 7 }
   0x3   :  { %v1829_v2 = vld [vmem:[%s2439_s1 + $0x38] sm:$0xff]   ;;  %1670 = vmatprep.subr.bf16.mxu1 %v1828_v1  ;;  %v1833_v6 = vld [vmem:[%s2439_s1 + $0x30] sm:$0xff]   ;;  %v1837_v10 = vld [vmem:[%s2439_s1 + $0x28] sm:$0xff]   ;;  %v289_v40 = vunpack.c.0.s8 %v288_v37 }
   0x4   :  { %v1830_v3 = vld [vmem:[%s2439_s1 + $0xb8] sm:$0xff]   ;;  %1649 = vmatpush3.bf16.msra.mxu0 %v1829_v2  ;;  %v1834_v7 = vld [vmem:[%s2439_s1 + $0xb0] sm:$0xff]   ;;  %v1838_v11 = vld [vmem:[%s2439_s1 + $0xa8] sm:$0xff]  }
   0x5   :  { %1671 = vmatpush3.bf16.msra.mxu1 %v1830_v3  ;;  %1650 = vmatprep.subr.bf16.mxu0 %v1831_v4  ;;  %v1839_v12 = vld [vmem:[%s2439_s1 + $0x60] sm:$0xff]   ;;  %v1843_v16 = vld [vmem:[%s2439_s1 + $0x58] sm:$0xff]   ;;  %v1847_v20 = vld [vmem:[%s2439_s1 + $0x50] sm:$0xff]   ;;  %v2119_v41 = vsub.s32 %v289_v40, %v2107_v33 }
   0x6   :  { %1672 = vmatprep.subr.bf16.mxu1 %v1832_v5  ;;  %v1840_v13 = vld [vmem:[%s2439_s1 + $0xe0] sm:$0xff]   ;;  %v1844_v17 = vld [vmem:[%s2439_s1 + $0xd8] sm:$0xff]   ;;  %v1848_v21 = vld [vmem:[%s2439_s1 + $0xd0] sm:$0xff]  }
   0x7   :  { %v1841_v14 = vld [vmem:[%s2439_s1 + $0x20] sm:$0xff]   ;;  %v1845_v18 = vld [vmem:[%s2439_s1 + $0x18] sm:$0xff]   ;;  %v1849_v22 = vld [vmem:[%s2439_s1 + $0x10] sm:$0xff]  }
   0x8   :  { %1651 = vmatpush3.bf16.msra.mxu0 %v1833_v6  ;;  %v1842_v15 = vld [vmem:[%s2439_s1 + $0xa0] sm:$0xff]   ;;  %v1846_v19 = vld [vmem:[%s2439_s1 + $0x98] sm:$0xff]   ;;  %v1850_v23 = vld [vmem:[%s2439_s1 + $0x90] sm:$0xff]  }
   0x9   :  { %1673 = vmatpush3.bf16.msra.mxu1 %v1834_v7  ;;  %1652 = vmatprep.subr.bf16.mxu0 %v1835_v8  ;;  %v1851_v24 = vld [vmem:[%s2439_s1 + $0x48] sm:$0xff]   ;;  %v1855_v29 = vld [vmem:[%s2439_s1 + $0x40] sm:$0xff]   ;;  %v1860_v35 = vld [vmem:[%s2439_s1 + $0x178] sm:$0xff]  }
   0xa   :  { %1674 = vmatprep.subr.bf16.mxu1 %v1836_v9  ;;  %v1852_v25 = vld [vmem:[%s2439_s1 + $0xc8] sm:$0xff]   ;;  %v1856_v30 = vld [vmem:[%s2439_s1 + $0xc0] sm:$0xff]   ;;  %v1861_v38 = vld [vmem:[%s2439_s1 + $0x1f8] sm:$0xff]  }
   0xb   :  { %v1853_v26 = vld [vmem:[%s2439_s1 + $0x8] sm:$0xff]   ;;  %v1857_v31 = vld [vmem:[%s2439_s1] sm:$0xff]   ;;  %v1862_v48 = vld [vmem:[%s2439_s1 + $0x138] sm:$0xff]  }
   0xc   :  { %1653 = vmatpush3.bf16.msra.mxu0 %v1837_v10  ;;  %v1854_v27 = vld [vmem:[%s2439_s1 + $0x88] sm:$0xff]   ;;  %v1858_v32 = vld [vmem:[%s2439_s1 + $0x80] sm:$0xff]   ;;  %v1864_v51 = vld [vmem:[%s2439_s1 + $0x170] sm:$0xff]  }
   0xd   :  { %1675 = vmatpush3.bf16.msra.mxu1 %v1838_v11  ;;  %1654 = vmatprep.subr.bf16.mxu0 %v1839_v12  ;;  %v19_v34 = vld [vmem:[%s2438_s0] sm:$0xff]  ;;  %v1863_v53 = vld [vmem:[%s2439_s1 + $0x1b8] sm:$0xff]   ;;  %v1865_v54 = vld [vmem:[%s2439_s1 + $0x1f0] sm:$0xff]  }
   0xe   :  { %1676 = vmatprep.subr.bf16.mxu1 %v1840_v13  ;;  %v286_v39 = vcombine.high %v19_v34, %v19_v34  ;;  %v293_v42 = vrot.slane %v19_v34, %v2119_v41  ;;  %v1866_v56 = vld [vmem:[%s2439_s1 + $0x130] sm:$0xff]   ;;  %v1868_v57 = vld [vmem:[%s2439_s1 + $0x168] sm:$0xff]   ;;  %v1872_v61 = vld [vmem:[%s2439_s1 + $0x160] sm:$0xff]  }
   0xf   :  { %v1867_v58 = vld [vmem:[%s2439_s1 + $0x1b0] sm:$0xff]   ;;  %v1869_v59 = vld [vmem:[%s2439_s1 + $0x1e8] sm:$0xff]   ;;  %v1873_v63 = vld [vmem:[%s2439_s1 + $0x1e0] sm:$0xff]  }
  0x10   :  { %1655 = vmatpush3.bf16.msra.mxu0 %v1841_v14  ;;  %v2123_v43 = vrot.slane %v286_v39, %v2119_v41  ;;  %v301_v44 = vcombine.high %v293_v42, %v293_v42  ;;  %v309_v45 = vrot.slane %v293_v42, %v2119_v41  ;;  %v1870_v60 = vld [vmem:[%s2439_s1 + $0x128] sm:$0xff]   ;;  %v1874_v0 = vld [vmem:[%s2439_s1 + $0x120] sm:$0xff]   ;;  %v1876_v1 = vld [vmem:[%s2439_s1 + $0x158] sm:$0xff]  }
  0x11   :  { %1677 = vmatpush3.bf16.msra.mxu1 %v1842_v15  ;;  %1656 = vmatprep.subr.bf16.mxu0 %v1843_v16  ;;  %v1871_v62 = vld [vmem:[%s2439_s1 + $0x1a8] sm:$0xff]   ;;  %v1875_v2 = vld [vmem:[%s2439_s1 + $0x1a0] sm:$0xff]   ;;  %v1877_v3 = vld [vmem:[%s2439_s1 + $0x1d8] sm:$0xff]  }
  0x12   :  { %1678 = vmatprep.subr.bf16.mxu1 %v1844_v17  ;;  %v302_v46 = vcombine.high %v2123_v43, %v2123_v43  ;;  %v323_v47 = vrot.slane %v301_v44, %v2119_v41  ;;  %v331_v50 = vcombine.high %v309_v45, %v309_v45  ;;  %v1878_v4 = vld [vmem:[%s2439_s1 + $0x118] sm:$0xff]   ;;  %v1880_v5 = vld [vmem:[%s2439_s1 + $0x150] sm:$0xff]   ;;  %v1884_v9 = vld [vmem:[%s2439_s1 + $0x148] sm:$0xff]   ;;  %v316_v17 = vrot.slane %v2123_v43, %v2119_v41 }
  0x13   :  { %v1879_v6 = vld [vmem:[%s2439_s1 + $0x198] sm:$0xff]   ;;  %v1881_v7 = vld [vmem:[%s2439_s1 + $0x1d0] sm:$0xff]   ;;  %v1885_v11 = vld [vmem:[%s2439_s1 + $0x1c8] sm:$0xff]  }
  0x14   :  { %1657 = vmatpush3.bf16.msra.mxu0 %v1845_v18  ;;  %v330_v49 = vrot.slane %v302_v46, %v2119_v41  ;;  %1200 = vmatprep.mubr.bf16.mxu0 %v323_v47  ;;  %v333_v52 = vcombine.high %v323_v47, %v323_v47  ;;  %v1882_v8 = vld [vmem:[%s2439_s1 + $0x110] sm:$0xff]   ;;  %v1886_v12 = vld [vmem:[%s2439_s1 + $0x108] sm:$0xff]   ;;  %v1888_v13 = vld [vmem:[%s2439_s1 + $0x140] sm:$0xff]  }
  0x15   :  { %1679 = vmatpush3.bf16.msra.mxu1 %v1846_v19  ;;  %1658 = vmatprep.subr.bf16.mxu0 %v1847_v20  ;;  %v1883_v10 = vld [vmem:[%s2439_s1 + $0x190] sm:$0xff]   ;;  %v1887_v14 = vld [vmem:[%s2439_s1 + $0x188] sm:$0xff]   ;;  %v1889_v15 = vld [vmem:[%s2439_s1 + $0x1c0] sm:$0xff]  }
  0x16   :  { %1680 = vmatprep.subr.bf16.mxu1 %v1848_v21  ;;  %v334_v55 = vcombine.high %v330_v49, %v330_v49  ;;  %1240 = vmatprep.mubr.bf16.mxu1 %v333_v52  ;;  %v1890_v16 = vld [vmem:[%s2439_s1 + $0x100] sm:$0xff]   ;;  %v1892_v18 = vld [vmem:[%s2439_s1 + $0x278] sm:$0xff]   ;;  %v1899_v28 = vld [vmem:[%s2439_s1 + $0x2b0] sm:$0xff]  }
  0x17   :  { %v1891_v19 = vld [vmem:[%s2439_s1 + $0x180] sm:$0xff]   ;;  %v1893_v20 = vld [vmem:[%s2439_s1 + $0x2f8] sm:$0xff]   ;;  %v1912_v40 = vld [vmem:[%s2439_s1 + $0x250] sm:$0xff]  }
  0x18   :  { %1659 = vmatpush3.bf16.msra.mxu0 %v1849_v22  ;;  %v1894_v21 = vld [vmem:[%s2439_s1 + $0x238] sm:$0xff]   ;;  %v332_v22 = vcombine.high %v316_v17, %v316_v17  ;;  %v1905_v34 = vld [vmem:[%s2439_s1 + $0x2e0] sm:$0xff]   ;;  %v1913_v43 = vld [vmem:[%s2439_s1 + $0x2d0] sm:$0xff]  }
  0x19   :  { %1681 = vmatpush3.bf16.msra.mxu1 %v1850_v23  ;;  %1660 = vmatprep.subr.bf16.mxu0 %v1851_v24  ;;  %v1896_v23 = vld [vmem:[%s2439_s1 + $0x270] sm:$0xff]   ;;  %v1895_v24 = vld [vmem:[%s2439_s1 + $0x2b8] sm:$0xff]   ;;  %v1907_v37 = vld [vmem:[%s2439_s1 + $0x2a0] sm:$0xff]  }
  0x1a   :  { %1682 = vmatprep.subr.bf16.mxu1 %v1852_v25  ;;  %v1897_v25 = vld [vmem:[%s2439_s1 + $0x2f0] sm:$0xff]   ;;  %v1908_v36 = vld [vmem:[%s2439_s1 + $0x258] sm:$0xff]   ;;  %v20_v46 = vld [vmem:[%s2438_s0 + $0x8] sm:$0xff] }
  0x1b   :  { %v1910_v39 = vld [vmem:[%s2439_s1 + $0x218] sm:$0xff]   ;;  %v1914_v44 = vld [vmem:[%s2439_s1 + $0x210] sm:$0xff]  }
  0x1c   :  { %1661 = vmatpush3.bf16.msra.mxu0 %v1853_v26  ;;  %v1898_v26 = vld [vmem:[%s2439_s1 + $0x230] sm:$0xff]   ;;  %v1911_v42 = vld [vmem:[%s2439_s1 + $0x298] sm:$0xff]  }
  0x1d   :  { %1683 = vmatpush3.bf16.msra.mxu1 %v1854_v27  ;;  %1662 = vmatprep.subr.bf16.mxu0 %v1855_v29  ;;  %v1900_v27 = vld [vmem:[%s2439_s1 + $0x268] sm:$0xff]   ;;  %v1915_v47 = vld [vmem:[%s2439_s1 + $0x290] sm:$0xff]  }
  0x1e   :  { %1684 = vmatprep.subr.bf16.mxu1 %v1856_v30  ;;  %v1901_v29 = vld [vmem:[%s2439_s1 + $0x2e8] sm:$0xff]  }
  0x1f   :  { %v1902_v30 = vld [vmem:[%s2439_s1 + $0x228] sm:$0xff]  }
  0x20   :  { %1663 = vmatpush3.bf16.msra.mxu0 %v1857_v31  ;;  %v1904_v31 = vld [vmem:[%s2439_s1 + $0x260] sm:$0xff]  }
  0x21   :  { %1685 = vmatpush3.bf16.msra.mxu1 %v1858_v32  ;;  %1692 = vmatprep.subr.bf16.mxu0 %v1860_v35  ;;  %v1903_v32 = vld [vmem:[%s2439_s1 + $0x2a8] sm:$0xff]   ;;  %v1906_v35 = vld [vmem:[%s2439_s1 + $0x220] sm:$0xff]  }
  0x22   :  { %1714 = vmatprep.subr.bf16.mxu1 %v1861_v38  ;;  %v1909_v38 = vld [vmem:[%s2439_s1 + $0x2d8] sm:$0xff]  }
  0x23   :  { %1201 = vmatmul.mubr.bf16.vlgmr.msra.gmra.mxu0 %v309_v45  ;;  %v1916_v45 = vld [vmem:[%s2439_s1 + $0x248] sm:$0xff]  }
  0x24   :  { %1693 = vmatpush3.bf16.msra.mxu0 %v1862_v48  ;;  %1241 = vmatmul.mubr.bf16.vlgmr.msra.gmra.mxu1 %v331_v50  ;;  %v342_v48 = vrot.slane %v20_v46, %v2119_v41  ;;  %v1917_v50 = vld [vmem:[%s2439_s1 + $0x2c8] sm:$0xff]  }
  0x25   :  { %1694 = vmatprep.subr.bf16.mxu0 %v1864_v51  ;;  %1715 = vmatpush3.bf16.msra.mxu1 %v1863_v53  ;;  %v1918_v51 = vld [vmem:[%s2439_s1 + $0x208] sm:$0xff]  }
  0x26   :  { %1280 = vmatprep.mubr.bf16.mxu0 %v330_v49  ;;  %1716 = vmatprep.subr.bf16.mxu1 %v1865_v54  ;;  %v335_v49 = vcombine.high %v20_v46, %v20_v46  ;;  %v350_v52 = vcombine.high %v342_v48, %v342_v48  ;;  %v1920_v54 = vld [vmem:[%s2439_s1 + $0x240] sm:$0xff]  }
  0x27   :  { %1320 = vmatprep.mubr.bf16.mxu1 %v334_v55  ;;  %v1919_v55 = vld [vmem:[%s2439_s1 + $0x288] sm:$0xff]  }
  0x28   :  { %1695 = vmatpush3.bf16.msra.mxu0 %v1866_v56  ;;  %v2308_v53 = vrot.slane %v335_v49, %v2119_v41  ;;  %v372_v56 = vrot.slane %v350_v52, %v2119_v41 }
  0x29   :  { %1696 = vmatprep.subr.bf16.mxu0 %v1868_v57  ;;  %1717 = vmatpush3.bf16.msra.mxu1 %v1867_v58  ;;  %v1921_v58 = vld [vmem:[%s2439_s1 + $0x2c0] sm:$0xff]  }
  0x2a   :  { %1718 = vmatprep.subr.bf16.mxu1 %v1869_v59  ;;  %v351_v57 = vcombine.high %v2308_v53, %v2308_v53  ;;  %v1922_v59 = vld [vmem:[%s2439_s1 + $0x200] sm:$0xff]  }
  0x2c   :  { %1697 = vmatpush3.bf16.msra.mxu0 %v1870_v60  ;;  %v382_v60 = vcombine.high %v372_v56, %v372_v56 }
  0x2d   :  { %1698 = vmatprep.subr.bf16.mxu0 %v1872_v61  ;;  %1719 = vmatpush3.bf16.msra.mxu1 %v1871_v62  ;;  %v358_v61 = vrot.slane %v342_v48, %v2119_v41  ;;  %v1924_v62 = vld [vmem:[%s2439_s1 + $0x378] sm:$0xff]  }
  0x2e   :  { %1720 = vmatprep.subr.bf16.mxu1 %v1873_v63  ;;  %v1923_v63 = vld [vmem:[%s2439_s1 + $0x280] sm:$0xff]  }
  0x30   :  { %1699 = vmatpush3.bf16.msra.mxu0 %v1874_v0  ;;  %v379_v0 = vrot.slane %v351_v57, %v2119_v41 }
  0x31   :  { %1700 = vmatprep.subr.bf16.mxu0 %v1876_v1  ;;  %1721 = vmatpush3.bf16.msra.mxu1 %v1875_v2  ;;  %v1925_v1 = vld [vmem:[%s2439_s1 + $0x3f8] sm:$0xff]  }
  0x32   :  { %1722 = vmatprep.subr.bf16.mxu1 %v1877_v3  ;;  %v1926_v2 = vld [vmem:[%s2439_s1 + $0x338] sm:$0xff]   ;;  %v380_v3 = vcombine.high %v358_v61, %v358_v61 }
  0x34   :  { %1701 = vmatpush3.bf16.msra.mxu0 %v1878_v4  ;;  %v1928_v4 = vld [vmem:[%s2439_s1 + $0x370] sm:$0xff]  }
  0x35   :  { %1702 = vmatprep.subr.bf16.mxu0 %v1880_v5  ;;  %1723 = vmatpush3.bf16.msra.mxu1 %v1879_v6  ;;  %v1927_v5 = vld [vmem:[%s2439_s1 + $0x3b8] sm:$0xff]   ;;  %v383_v6 = vcombine.high %v379_v0, %v379_v0 }
  0x36   :  { %1724 = vmatprep.subr.bf16.mxu1 %v1881_v7  ;;  %v1929_v7 = vld [vmem:[%s2439_s1 + $0x3f0] sm:$0xff]  }
  0x38   :  { %1703 = vmatpush3.bf16.msra.mxu0 %v1882_v8  ;;  %v1930_v8 = vld [vmem:[%s2439_s1 + $0x330] sm:$0xff]  }
  0x39   :  { %1704 = vmatprep.subr.bf16.mxu0 %v1884_v9  ;;  %1725 = vmatpush3.bf16.msra.mxu1 %v1883_v10  ;;  %v1932_v9 = vld [vmem:[%s2439_s1 + $0x368] sm:$0xff]   ;;  %v1931_v10 = vld [vmem:[%s2439_s1 + $0x3b0] sm:$0xff]  }
  0x3a   :  { %1726 = vmatprep.subr.bf16.mxu1 %v1885_v11  ;;  %v1933_v11 = vld [vmem:[%s2439_s1 + $0x3e8] sm:$0xff]  }
  0x3c   :  { %1705 = vmatpush3.bf16.msra.mxu0 %v1886_v12  ;;  %v1934_v12 = vld [vmem:[%s2439_s1 + $0x328] sm:$0xff]  }
  0x3d   :  { %1706 = vmatprep.subr.bf16.mxu0 %v1888_v13  ;;  %1727 = vmatpush3.bf16.msra.mxu1 %v1887_v14  ;;  %v1936_v13 = vld [vmem:[%s2439_s1 + $0x360] sm:$0xff]   ;;  %v1935_v14 = vld [vmem:[%s2439_s1 + $0x3a8] sm:$0xff]  }
  0x3e   :  { %1728 = vmatprep.subr.bf16.mxu1 %v1889_v15  ;;  %v1937_v15 = vld [vmem:[%s2439_s1 + $0x3e0] sm:$0xff]  }
  0x40   :  { %1707 = vmatpush3.bf16.msra.mxu0 %v1890_v16  ;;  %v1938_v16 = vld [vmem:[%s2439_s1 + $0x320] sm:$0xff]  }
  0x41   :  { %1736 = vmatprep.subr.bf16.mxu0 %v1892_v18  ;;  %1729 = vmatpush3.bf16.msra.mxu1 %v1891_v19  ;;  %v1939_v18 = vld [vmem:[%s2439_s1 + $0x3a0] sm:$0xff]   ;;  %v1941_v19 = vld [vmem:[%s2439_s1 + $0x3d8] sm:$0xff]  }
  0x42   :  { %1758 = vmatprep.subr.bf16.mxu1 %v1893_v20  ;;  %v1942_v20 = vld [vmem:[%s2439_s1 + $0x318] sm:$0xff]  }
  0x43   :  { %1281 = vmatmul.mubr.bf16.vlgmr.msra.gmra.mxu0 %v316_v17  ;;  %v1940_v17 = vld [vmem:[%s2439_s1 + $0x358] sm:$0xff]  }
  0x44   :  { %1737 = vmatpush3.bf16.msra.mxu0 %v1894_v21  ;;  %1321 = vmatmul.mubr.bf16.vlgmr.msra.gmra.mxu1 %v332_v22  ;;  %v1944_v21 = vld [vmem:[%s2439_s1 + $0x350] sm:$0xff]   ;;  %v1943_v22 = vld [vmem:[%s2439_s1 + $0x398] sm:$0xff]  }
  0x45   :  { %1738 = vmatprep.subr.bf16.mxu0 %v1896_v23  ;;  %1759 = vmatpush3.bf16.msra.mxu1 %v1895_v24  ;;  %v1945_v23 = vld [vmem:[%s2439_s1 + $0x3d0] sm:$0xff]  }
  0x46   :  { %1760 = vmatprep.subr.bf16.mxu1 %v1897_v25  ;;  %1360 = vmatprep.mubr.bf16.mxu0 %v372_v56  ;;  %v1946_v24 = vld [vmem:[%s2439_s1 + $0x310] sm:$0xff]   ;;  %v1948_v25 = vld [vmem:[%s2439_s1 + $0x348] sm:$0xff]  }
  0x47   :  { %1400 = vmatprep.mubr.bf16.mxu1 %v382_v60 }
  0x48   :  { %1739 = vmatpush3.bf16.msra.mxu0 %v1898_v26  ;;  %v1947_v26 = vld [vmem:[%s2439_s1 + $0x390] sm:$0xff]  }
  0x49   :  { %1740 = vmatprep.subr.bf16.mxu0 %v1900_v27  ;;  %1761 = vmatpush3.bf16.msra.mxu1 %v1899_v28 }
  0x4a   :  { %1762 = vmatprep.subr.bf16.mxu1 %v1901_v29 }
  0x4c   :  { %1741 = vmatpush3.bf16.msra.mxu0 %v1902_v30 }
  0x4d   :  { %1742 = vmatprep.subr.bf16.mxu0 %v1904_v31  ;;  %1763 = vmatpush3.bf16.msra.mxu1 %v1903_v32 }
  0x4e   :  { %1764 = vmatprep.subr.bf16.mxu1 %v1905_v34 }
  0x50   :  { %1743 = vmatpush3.bf16.msra.mxu0 %v1906_v35 }
  0x51   :  { %1744 = vmatprep.subr.bf16.mxu0 %v1908_v36  ;;  %1765 = vmatpush3.bf16.msra.mxu1 %v1907_v37 }
  0x52   :  { %1766 = vmatprep.subr.bf16.mxu1 %v1909_v38 }
  0x54   :  { %1745 = vmatpush3.bf16.msra.mxu0 %v1910_v39 }
  0x55   :  { %1746 = vmatprep.subr.bf16.mxu0 %v1912_v40  ;;  %1767 = vmatpush3.bf16.msra.mxu1 %v1911_v42 }
  0x56   :  { %1768 = vmatprep.subr.bf16.mxu1 %v1913_v43 }
  0x58   :  { %1747 = vmatpush3.bf16.msra.mxu0 %v1914_v44 }
  0x59   :  { %1748 = vmatprep.subr.bf16.mxu0 %v1916_v45  ;;  %1769 = vmatpush3.bf16.msra.mxu1 %v1915_v47 }
  0x5a   :  { %1770 = vmatprep.subr.bf16.mxu1 %v1917_v50 }
  0x5c   :  { %1749 = vmatpush3.bf16.msra.mxu0 %v1918_v51 }
  0x5d   :  { %1750 = vmatprep.subr.bf16.mxu0 %v1920_v54  ;;  %1771 = vmatpush3.bf16.msra.mxu1 %v1919_v55 }
  0x5e   :  { %1772 = vmatprep.subr.bf16.mxu1 %v1921_v58 }
  0x60   :  { %1751 = vmatpush3.bf16.msra.mxu0 %v1922_v59 }
  0x61   :  { %1780 = vmatprep.subr.bf16.mxu0 %v1924_v62  ;;  %1773 = vmatpush3.bf16.msra.mxu1 %v1923_v63 }
  0x62   :  { %1802 = vmatprep.subr.bf16.mxu1 %v1925_v1 }
  0x63   :  { %1361 = vmatmul.mubr.bf16.vlgmr.msra.gmra.mxu0 %v358_v61 }
  0x64   :  { %1781 = vmatpush3.bf16.msra.mxu0 %v1926_v2  ;;  %1440 = vmatprep.mubr.bf16.mxu0 %v379_v0 }
  0x65   :  { %1401 = vmatmul.mubr.bf16.vlgmr.msra.gmra.mxu1 %v380_v3  ;;  %1782 = vmatprep.subr.bf16.mxu0 %v1928_v4 }
  0x66   :  { %1803 = vmatpush3.bf16.msra.mxu1 %v1927_v5  ;;  %1480 = vmatprep.mubr.bf16.mxu1 %v383_v6 }
  0x67   :  { %1804 = vmatprep.subr.bf16.mxu1 %v1929_v7 }
  0x68   :  { %1783 = vmatpush3.bf16.msra.mxu0 %v1930_v8 }
  0x69   :  { %1784 = vmatprep.subr.bf16.mxu0 %v1932_v9 }
  0x6a   :  { %1805 = vmatpush3.bf16.msra.mxu1 %v1931_v10 }
  0x6b   :  { %1806 = vmatprep.subr.bf16.mxu1 %v1933_v11 }
  0x6c   :  { %1785 = vmatpush3.bf16.msra.mxu0 %v1934_v12 }
  0x6d   :  { %1786 = vmatprep.subr.bf16.mxu0 %v1936_v13 }
  0x6e   :  { %1807 = vmatpush3.bf16.msra.mxu1 %v1935_v14 }
  0x6f   :  { %1808 = vmatprep.subr.bf16.mxu1 %v1937_v15 }
  0x70   :  { %1787 = vmatpush3.bf16.msra.mxu0 %v1938_v16 }
  0x71   :  { %1788 = vmatprep.subr.bf16.mxu0 %v1940_v17 }
  0x72   :  { %1809 = vmatpush3.bf16.msra.mxu1 %v1939_v18 }
  0x73   :  { %1810 = vmatprep.subr.bf16.mxu1 %v1941_v19 }
  0x74   :  { %1789 = vmatpush3.bf16.msra.mxu0 %v1942_v20 }
  0x75   :  { %1790 = vmatprep.subr.bf16.mxu0 %v1944_v21 }
  0x76   :  { %1811 = vmatpush3.bf16.msra.mxu1 %v1943_v22 }
  0x77   :  { %9 = vsyncpa [#allocation3], 0  ;;  %1812 = vmatprep.subr.bf16.mxu1 %v1945_v23  ;;  %v1949_v27 = vld [vmem:[%s2439_s1 + $0x3c8] sm:$0xff]   ;;  %v1952_v29 = vld [vmem:[%s2439_s1 + $0x340] sm:$0xff]   ;;  %v365_v34 = vrot.slane %v2308_v53, %v2119_v41  ;;  %s1985_s14 = smov [#allocation2]   ;;  %vm1503_vm2 = vcmask 189440  }
  0x78   :  { %1791 = vmatpush3.bf16.msra.mxu0 %v1946_v24  ;;  %v1950_v28 = vld [vmem:[%s2439_s1 + $0x308] sm:$0xff]   ;;  %v1953_v31 = vld [vmem:[%s2439_s1 + $0x3c0] sm:$0xff]   ;;  %s1511_s15 = sshll.u32 %s1985_s14, 4  ;;  %s1512_s15 = int_to_ptr.vmem [resolvable:$true] %s1511_s15 }
  0x79   :  { %1792 = vmatprep.subr.bf16.mxu0 %v1948_v25  ;;  %v1951_v30 = vld [vmem:[%s2439_s1 + $0x388] sm:$0xff]   ;;  %v1954_v32 = vld [vmem:[%s2439_s1 + $0x300] sm:$0xff]   ;;  %v381_v36 = vcombine.high %v365_v34, %v365_v34  ;;  %s1961_s16 = scalar_lea.vmem %s1512_s15, 32  ;;  %p1966_p1 = scmp.lt.s32.totalorder %s1512_s15, %s1512_s15 }
  0x7a   :  { %1813 = vmatpush3.bf16.msra.mxu1 %v1947_v26  ;;  %v1955_v35 = vld [vmem:[%s2439_s1 + $0x380] sm:$0xff]   ;;  %p1962_p0 = scmp.ne.s32.totalorder %s1512_s15, %s1961_s16  ;;  %p1967_p2 = scmp.lt.s32.totalorder %s1961_s16, %s1961_s16 }
  0x7b   :  { %1814 = vmatprep.subr.bf16.mxu1 %v1949_v27  ;;  %v1519_v39 = vld [vmem:[%s2440_s2] ss:$0 sm:$0xff]  ;;  %v1499_v27 = vsub.s32 0, %v2107_v33 }
  0x7c   :  { %1793 = vmatpush3.bf16.msra.mxu0 %v1950_v28  ;;  %v1494_v26 = vld [vmem:[%s2441_s3] sm:$0x1]  ;;  %v1984_v28 = vmov 0   ;;  %p1968_p3 = por %p1967_p2, %p1966_p1 }
  0x7d   :  { %1794 = vmatprep.subr.bf16.mxu0 %v1952_v29  ;;  %vm1495_vm0 = vcmp.gt.f32.partialorder %v1494_v26, 0.0 }
  0x7e   :  { %1815 = vmatpush3.bf16.msra.mxu1 %v1951_v30  ;;  %v1496_v29 = vsel %vm1495_vm0, 1, %v1984_v28  ;;  %p1969_p4 = pnand %p1968_p3, %p1962_p0 }
  0x7f   :  { %1816 = vmatprep.subr.bf16.mxu1 %v1953_v31  ;;  %v1500_v30 = vrot.slane %v1496_v29, %v1499_v27 }
  0x80   :  { %1795 = vmatpush3.bf16.msra.mxu0 %v1954_v32 }
  0x81   :  { %vm1501_vm1 = vcmp.eq.s32.totalorder %v1500_v30, 1 }
  0x82   :  { %1817 = vmatpush3.bf16.msra.mxu1 %v1955_v35 }
  0x83   :  { %1441 = vmatmul.mubr.bf16.vlgmr.msra.gmra.mxu0 %v365_v34 }
  0x85   :  { %1481 = vmatmul.mubr.bf16.vlgmr.msra.gmra.mxu1 %v381_v36 }
  0xe3   :  { %v1664_v37 = vpop.f32.mrf.mxu0 }
  0xe4   :  { %v1686_v38 = vpop.f32.mrf.mxu1 }
  0xe5   :  { %v1665_v40 = vpop.f32.mrf.mxu0 }
  0xe6   :  { %v1666_v42 = vadd.f32 %v1665_v40, %v1664_v37  ;;  %v1687_v41 = vpop.f32.mrf.mxu1 }
  0xe7   :  { %v1667_v43 = vpop.f32.mrf.mxu0  ;;  %v1688_v45 = vadd.f32 %v1687_v41, %v1686_v38 }
  0xe8   :  { %v1203_v44 = vadd.f32 %v1666_v42, %v1519_v39  ;;  %v1689_v46 = vpop.f32.mrf.mxu1 }
  0xe9   :  { %v1668_v47 = vpop.f32.mrf.mxu0 }
  0xea   :  { %v1243_v48 = vadd.f32 %v1688_v45, %v1203_v44  ;;  %v1690_v49 = vpop.f32.mrf.mxu1 }
 0x103   :  { %v1708_v50 = vpop.f32.mrf.mxu0 }
 0x104   :  { %v1730_v51 = vpop.f32.mrf.mxu1 }
 0x105   :  { %v1709_v52 = vpop.f32.mrf.mxu0 }
 0x106   :  { %v1731_v53 = vpop.f32.mrf.mxu1  ;;  %v1710_v2 = vadd.f32 %v1709_v52, %v1708_v50 }
 0x107   :  { %v1711_v54 = vpop.f32.mrf.mxu0  ;;  %v1732_v4 = vadd.f32 %v1731_v53, %v1730_v51 }
 0x108   :  { %v1733_v55 = vpop.f32.mrf.mxu1  ;;  %v1283_v3 = vadd.f32 %v1710_v2, %v1243_v48 }
 0x109   :  { %v1712_v56 = vpop.f32.mrf.mxu0 }
 0x10a   :  { %v1734_v57 = vpop.f32.mrf.mxu1  ;;  %v1323_v6 = vadd.f32 %v1732_v4, %v1283_v3 }
 0x123   :  { %v1752_v58 = vpop.f32.mrf.mxu0 }
 0x125   :  { %v1774_v59 = vpop.f32.mrf.mxu1  ;;  %v1753_v60 = vpop.f32.mrf.mxu0 }
 0x126   :  { %v1754_v5 = vadd.f32 %v1753_v60, %v1752_v58 }
 0x127   :  { %v1775_v61 = vpop.f32.mrf.mxu1  ;;  %v1755_v62 = vpop.f32.mrf.mxu0 }
 0x128   :  { %v1363_v7 = vadd.f32 %v1754_v5, %v1323_v6  ;;  %v1776_v8 = vadd.f32 %v1775_v61, %v1774_v59 }
 0x129   :  { %v1777_v63 = vpop.f32.mrf.mxu1  ;;  %v1756_v0 = vpop.f32.mrf.mxu0 }
 0x12a   :  { %v1403_v12 = vadd.f32 %v1776_v8, %v1363_v7 }
 0x12b   :  { %v1778_v1 = vpop.f32.mrf.mxu1 }
 0x143   :  { %v1796_v9 = vpop.f32.mrf.mxu0 }
 0x145   :  { %v1818_v10 = vpop.f32.mrf.mxu1  ;;  %v1797_v11 = vpop.f32.mrf.mxu0 }
 0x146   :  { %v1798_v13 = vadd.f32 %v1797_v11, %v1796_v9 }
 0x147   :  { %v1819_v14 = vpop.f32.mrf.mxu1  ;;  %v1799_v15 = vpop.f32.mrf.mxu0 }
 0x148   :  { %v1443_v16 = vadd.f32 %v1798_v13, %v1403_v12  ;;  %v1820_v17 = vadd.f32 %v1819_v14, %v1818_v10 }
 0x149   :  { %v1821_v18 = vpop.f32.mrf.mxu1  ;;  %v1800_v19 = vpop.f32.mrf.mxu0 }
 0x14a   :  { %v1483_v20 = vadd.f32 %v1820_v17, %v1443_v16 }
 0x14b   :  { %v1822_v21 = vpop.f32.mrf.mxu1 }
 0x14c   :  { %v1488_v22 = vsub.f32 0.0, %v1483_v20 }
 0x14e   :  { %v1489_v23 = vmul.f32 1.442695, %v1488_v22 }
 0x150   :  { %1957 = vpow2.f32 %v1489_v23 }
 0x15d   :  { %v1958_v24 = vpop.eup %1957 }
 0x15e   :  { %v1491_v25 = vadd.f32 1.0, %v1958_v24 }
 0x160   :  { %1959 = vrcp.f32 %v1491_v25 }
 0x16d   :  { %v1960_v31 = vpop.eup %1959 }
 0x16e   :  { %v1502_v32 = vsel %vm1501_vm1, %v1960_v31, %v1483_v20 }
 0x16f   :  { %1504 = vst.msk [vmem:[#allocation2] sm:$0x3] %vm1503_vm2, %v1502_v32 }
 0x170   :  { %1972 = shalt.err (!%p1969_p4)
}
 0x171   :  { %1514 = dma.vmem_to_hbm [thread:$0]  %s1512_s15, 32, %s2442_s4, [#allocation3]  }
 0x172   :  { %1981 = dma.done.wait [#allocation3], 32  }
 0x173   :  { %1982 = vsyncadd [#allocation3], 4294967264 }
 0x174   :  { %1518 = vsyncpa [#allocation3], 1 }

</bundles_post_ra>
